<compile_context>
chip_gen: v5e
topology: v5e:2x2
jax: 0.10.0
libtpu: 0.0.40
codegen_flags: <defaults>
</compile_context>

<pallas_src>
import jax
import jax.numpy as jnp
from jax.experimental import pallas as pl
from jax.experimental.pallas import tpu as pltpu

IN_DIM = 784
HID_DIM = 120
OUT_DIM = 10

HID_PAD = 128   # 120 -> 128: full-lane hidden activations + clean K for 2nd dot


def _round_up(n: int, m: int) -> int:
    return ((n + m - 1) // m) * m


def _sublane(dtype) -> int:
    # second-to-last-dim tiling multiple: f32 -> 8, bf16 -> 16, int8/fp8 -> 32
    return max(8, 32 // jnp.dtype(dtype).itemsize)


def mlp_kernel(x_ref, w1_ref, b1_ref, w2_ref, b2_ref, o_ref):
    # fc1 (MXU, bf16 inputs) + bias + ReLU (VPU) on the f32 accumulator
    h = jnp.dot(x_ref[...], w1_ref[...], preferred_element_type=jnp.float32)
    h = jnp.maximum(h + b1_ref[...], 0.0)                     # (TB,128)+(1,128)
    # fc2 (MXU) + bias; cast h back to the weight dtype for the bf16 MXU path
    out = jnp.dot(h.astype(w2_ref.dtype), w2_ref[...],
                  preferred_element_type=jnp.float32)
    o_ref[...] = (out + b2_ref[...]).astype(o_ref.dtype)      # (TB,10)+(1,10)


def pad_params(w1, b1, w2, b2, compute_dtype=jnp.bfloat16):
    """Pad (hidden 120->128) and cast weights to the compute dtype ONCE.

    w1: (784,120), b1: (1,120) or (120,), w2: (120,10), b2: (1,10) or (10,).
    Biases stay f32 (added to the f32 accumulator).
    """
    w1p = jnp.zeros((IN_DIM, HID_PAD), compute_dtype).at[:, :HID_DIM].set(
        w1.astype(compute_dtype))
    b1p = jnp.zeros((1, HID_PAD), jnp.float32).at[:, :HID_DIM].set(
        b1.reshape(1, -1).astype(jnp.float32))
    w2p = jnp.zeros((HID_PAD, OUT_DIM), compute_dtype).at[:HID_DIM, :].set(
        w2.astype(compute_dtype))
    b2p = b2.reshape(1, OUT_DIM).astype(jnp.float32)
    return w1p, b1p, w2p, b2p


def easy_model_forward(x, w1p, b1p, w2p, b2p, *, tb: int = 2048):
    """x: (B, 784). Padded params from pad_params(). Returns (B, 10) f32 logits."""
    B, in_dim = x.shape
    compute_dtype = w1p.dtype
    x = x.astype(compute_dtype)
    itemsize = jnp.dtype(compute_dtype).itemsize
    sub = _sublane(compute_dtype)

    # Batch tile: dtype-aware sublane multiple, capped at `tb`, and sized so a
    # realistic batch yields >= 2 tiles (balances v7x's 2 TensorCores).
    TB = min(tb, _round_up(pl.cdiv(B, 2), sub))
    TB = _round_up(TB, sub)
    B_pad = _round_up(B, TB)
    if B_pad != B:
        x = jnp.pad(x, ((0, B_pad - B), (0, 0)))

    n_tiles = B_pad // TB
    grid = (n_tiles,)

    # VMEM budget: triple-buffered x tile, double-buffered (lane-padded) out
    # tile, h staging (f32 + bf16 cast), resident weights, + headroom.
    x_tile_bytes = TB * in_dim * itemsize
    out_tile_bytes = TB * 128 * 4
    h_bytes = TB * HID_PAD * (4 + itemsize)
    w_bytes = (IN_DIM * HID_PAD + HID_PAD * 128) * itemsize + (HID_PAD + 128) * 4
    budget = 3 * x_tile_bytes + 2 * out_tile_bytes + h_bytes + w_bytes + (4 << 20)
    vmem_limit = int(min(max(budget, 16 << 20), 48 << 20))

    # Triple-buffer the single streamed operand when the grid is deep enough.
    if n_tiles >= 3:
        x_spec = pl.BlockSpec((TB, in_dim), lambda i: (i, 0),
                              pipeline_mode=pl.Buffered(3))
    else:
        x_spec = pl.BlockSpec((TB, in_dim), lambda i: (i, 0))

    flops = 2 * B_pad * (in_dim * HID_PAD + HID_PAD * OUT_DIM)
    bytes_accessed = (
        B_pad * in_dim * itemsize
        + w1p.size * itemsize + b1p.size * 4
        + w2p.size * itemsize + b2p.size * 4
        + B_pad * OUT_DIM * 4
    )

    out = pl.pallas_call(
        mlp_kernel,
        out_shape=jax.ShapeDtypeStruct((B_pad, OUT_DIM), jnp.float32),
        grid=grid,
        in_specs=[
            x_spec,                                            # streamed per tile
            pl.BlockSpec((in_dim, HID_PAD), lambda i: (0, 0)),  # resident weights
            pl.BlockSpec((1, HID_PAD), lambda i: (0, 0)),
            pl.BlockSpec((HID_PAD, OUT_DIM), lambda i: (0, 0)),
            pl.BlockSpec((1, OUT_DIM), lambda i: (0, 0)),
        ],
        out_specs=pl.BlockSpec((TB, OUT_DIM), lambda i: (i, 0)),  # full last dim
        compiler_params=pltpu.CompilerParams(
            dimension_semantics=("parallel",),   # shard batch tiles across TCs (v7x)
            vmem_limit_bytes=vmem_limit,
        ),
        cost_estimate=pl.CostEstimate(
            flops=flops, transcendentals=0, bytes_accessed=bytes_accessed),
    )(x, w1p, b1p, w2p, b2p)

    return out if B_pad == B else out[:B]


def init_params(key):
    """Deterministic init mimicking PyTorch Linear default U(-1/sqrt(fan_in), +)."""
    k1, k2, k3, k4 = jax.random.split(key, 4)
    bound1 = 1.0 / jnp.sqrt(IN_DIM)
    bound2 = 1.0 / jnp.sqrt(HID_DIM)
    # stored as (in, out) — transposed relative to PyTorch's (out, in)
    w1 = jax.random.uniform(k1, (IN_DIM, HID_DIM), jnp.float32, -bound1, bound1)
    b1 = jax.random.uniform(k2, (1, HID_DIM), jnp.float32, -bound1, bound1)
    w2 = jax.random.uniform(k3, (HID_DIM, OUT_DIM), jnp.float32, -bound2, bound2)
    b2 = jax.random.uniform(k4, (1, OUT_DIM), jnp.float32, -bound2, bound2)
    return w1, b1, w2, b2


if __name__ == "__main__":
    key = jax.random.PRNGKey(0)
    k_x, k_p = jax.random.split(key)

    B = 8
    x = jax.random.normal(k_x, (B, IN_DIM), jnp.float32)
    w1, b1, w2, b2 = init_params(k_p)

    # Pad/cast weights ONCE (hoisted out of the per-call path).
    w1p, b1p, w2p, b2p = pad_params(w1, b1, w2, b2, compute_dtype=jnp.bfloat16)

    out = easy_model_forward(x, w1p, b1p, w2p, b2p)
    out = jax.block_until_ready(out)

    # Reference with the same bf16-rounded inputs (f32 math), loose bf16 tolerance.
    bf = jnp.bfloat16
    xb = x.astype(bf).astype(jnp.float32)
    w1b = w1.astype(bf).astype(jnp.float32)
    w2b = w2.astype(bf).astype(jnp.float32)
    h_ref = jnp.maximum(xb @ w1b + b1, 0.0)
    ref = h_ref.astype(bf).astype(jnp.float32) @ w2b + b2

    assert out.shape == (B, OUT_DIM)
    assert jnp.allclose(out, ref, atol=2e-2, rtol=2e-2)

    print("KERNEL_OK")
</pallas_src>

<mosaic_0001>
module attributes {stable_mosaic.version = 11 : i64} {
  func.func @mlp_kernel(%arg0: i32, %arg1: memref<16x784xbf16, #tpu.memory_space<vmem>>, %arg2: memref<784x128xbf16, #tpu.memory_space<vmem>>, %arg3: memref<1x128xf32, #tpu.memory_space<vmem>>, %arg4: memref<128x10xbf16, #tpu.memory_space<vmem>>, %arg5: memref<1x10xf32, #tpu.memory_space<vmem>>, %arg6: memref<16x10xf32, #tpu.memory_space<vmem>>) attributes {dimension_semantics = [#tpu.dimension_semantics<parallel>], iteration_bounds = array<i64: 1>, scalar_prefetch = 0 : i64, scratch_operands = 0 : i64, tpu.core_type = #tpu.core_type<tc>, window_params = [{transform_indices = @transform_0, window_bounds = array<i64: 16, 784>}, {pipeline_mode = #tpu.pipeline_mode<synchronous>, transform_indices = @transform_1, window_bounds = array<i64: 784, 128>}, {pipeline_mode = #tpu.pipeline_mode<synchronous>, transform_indices = @transform_2, window_bounds = array<i64: 1, 128>}, {pipeline_mode = #tpu.pipeline_mode<synchronous>, transform_indices = @transform_3, window_bounds = array<i64: 128, 10>}, {pipeline_mode = #tpu.pipeline_mode<synchronous>, transform_indices = @transform_4, window_bounds = array<i64: 1, 10>}, {transform_indices = @transform_5, window_bounds = array<i64: 16, 10>}]} {
    %c0 = arith.constant 0 : index
    %c0_0 = arith.constant 0 : index
    %0 = vector.load %arg1[%c0, %c0_0] : memref<16x784xbf16, #tpu.memory_space<vmem>>, vector<16x784xbf16>
    %c0_1 = arith.constant 0 : index
    %c0_2 = arith.constant 0 : index
    %1 = vector.load %arg2[%c0_1, %c0_2] : memref<784x128xbf16, #tpu.memory_space<vmem>>, vector<784x128xbf16>
    %cst = arith.constant dense<0.000000e+00> : vector<16x128xf32>
    %2 = tpu.matmul %0, %1, %cst {dimension_numbers = #tpu.dot_dimension_numbers<[1], [0], [0], [1], [0, 0, 1, 1], [], []>} : vector<16x784xbf16>, vector<784x128xbf16>, vector<16x128xf32> -> vector<16x128xf32>
    %c0_3 = arith.constant 0 : index
    %c0_4 = arith.constant 0 : index
    %3 = vector.load %arg3[%c0_3, %c0_4] : memref<1x128xf32, #tpu.memory_space<vmem>>, vector<1x128xf32>
    %4 = vector.broadcast %3 : vector<1x128xf32> to vector<16x128xf32>
    %5 = arith.addf %2, %4 : vector<16x128xf32>
    %cst_5 = arith.constant 0.000000e+00 : f32
    %6 = vector.broadcast %cst_5 : f32 to vector<16x128xf32>
    %7 = arith.maximumf %5, %6 : vector<16x128xf32>
    %8 = arith.truncf %7 : vector<16x128xf32> to vector<16x128xbf16>
    %c0_6 = arith.constant 0 : index
    %c0_7 = arith.constant 0 : index
    %9 = vector.load %arg4[%c0_6, %c0_7] : memref<128x10xbf16, #tpu.memory_space<vmem>>, vector<128x10xbf16>
    %cst_8 = arith.constant dense<0.000000e+00> : vector<16x10xf32>
    %10 = tpu.matmul %8, %9, %cst_8 {dimension_numbers = #tpu.dot_dimension_numbers<[1], [0], [0], [1], [0, 0, 1, 1], [], []>} : vector<16x128xbf16>, vector<128x10xbf16>, vector<16x10xf32> -> vector<16x10xf32>
    %c0_9 = arith.constant 0 : index
    %c0_10 = arith.constant 0 : index
    %11 = vector.load %arg5[%c0_9, %c0_10] : memref<1x10xf32, #tpu.memory_space<vmem>>, vector<1x10xf32>
    %12 = vector.broadcast %11 : vector<1x10xf32> to vector<16x10xf32>
    %13 = arith.addf %10, %12 : vector<16x10xf32>
    %c0_11 = arith.constant 0 : index
    %c0_12 = arith.constant 0 : index
    %14 = vector.load %arg6[%c0_11, %c0_12] : memref<16x10xf32, #tpu.memory_space<vmem>>, vector<16x10xf32>
    tpu.vector_store %arg6[%c0_11, %c0_12], %13 {strides = array<i32>} : memref<16x10xf32, #tpu.memory_space<vmem>>, vector<16x10xf32>,
    return
  }
  func.func @transform_0(%arg0: i32) -> (i32, i32) {
    %c0_i32 = arith.constant 0 : i32
    %c0_i32_0 = arith.constant 0 : i32
    return %arg0, %c0_i32 : i32, i32
  }
  func.func @transform_1(%arg0: i32) -> (i32, i32) {
    %c0_i32 = arith.constant 0 : i32
    %c0_i32_0 = arith.constant 0 : i32
    %c0_i32_1 = arith.constant 0 : i32
    return %c0_i32, %c0_i32_0 : i32, i32
  }
  func.func @transform_2(%arg0: i32) -> (i32, i32) {
    %c0_i32 = arith.constant 0 : i32
    %c0_i32_0 = arith.constant 0 : i32
    %c0_i32_1 = arith.constant 0 : i32
    return %c0_i32, %c0_i32_0 : i32, i32
  }
  func.func @transform_3(%arg0: i32) -> (i32, i32) {
    %c0_i32 = arith.constant 0 : i32
    %c0_i32_0 = arith.constant 0 : i32
    %c0_i32_1 = arith.constant 0 : i32
    return %c0_i32, %c0_i32_0 : i32, i32
  }
  func.func @transform_4(%arg0: i32) -> (i32, i32) {
    %c0_i32 = arith.constant 0 : i32
    %c0_i32_0 = arith.constant 0 : i32
    %c0_i32_1 = arith.constant 0 : i32
    return %c0_i32, %c0_i32_0 : i32, i32
  }
  func.func @transform_5(%arg0: i32) -> (i32, i32) {
    %c0_i32 = arith.constant 0 : i32
    %c0_i32_0 = arith.constant 0 : i32
    return %arg0, %c0_i32 : i32, i32
  }
}

</mosaic_0001>

<bundles_post_ra>
// kernel: tpu_custom_call.1
= control target key start
LH: loop header
LB: loop body
LE: loop exit
PB: predicated region body
PF: predicated region fallthrough
CT: control target
= control target key end

     0   :  { %10 = vsyncpa [#allocation3], 0  ;;  %s1181_s0 = inlined_call_operand.vmem [shape: bf16[16,784], index: 0, kind: input, shape index: {}]   ;;  %s1182_s1 = inlined_call_operand.hbm [shape: bf16[784,128], index: 1, kind: input, shape index: {}]   ;;  %s1183_s2 = inlined_call_operand.vmem [shape: f32[1,128], index: 2, kind: input, shape index: {}]   ;;  %s1184_s3 = inlined_call_operand.vmem [shape: bf16[128,10], index: 3, kind: input, shape index: {}]   ;;  %s1185_s4 = inlined_call_operand.vmem [shape: f32[1,10], index: 4, kind: input, shape index: {}]   ;;  %s1186_s5 = inlined_call_operand.hbm [shape: f32[16,10], index: 5, kind: output, shape index: {}]  }
   0x1   :  { %11 = vsyncpa [#allocation4], 0  ;;  %s18_s20 = sshll.u32 %s1182_s1, 4  ;;  %s1067_s21 = smov [#allocation2]   ;;  %s19_s20 = int_to_ptr.hbm [resolvable:$true] %s18_s20 }
   0x2   :  { %s20_s22 = sshll.u32 %s1067_s21, 4  ;;  %s1068_s23 = smov 64   ;;  %s21_s22 = int_to_ptr.vmem [resolvable:$true] %s20_s22 }
   0x3   :  { %s1069_s24 = smov 4  }
   0x4   :  { %26 = dma.hbm_to_vmem [thread:$0]  %s19_s20, 6272, %s21_s22, [#allocation3], %s1068_s23, %s1068_s23, %s1069_s24  }
   0x5   :  { %1063 = dma.done.wait [#allocation3], 6272  }
   0x6   :  { %1064 = vsyncadd [#allocation3], 4294961024  ;;  %v957_v0 = vld [vmem:[#allocation2 + $0x38] sm:$0xff]  ;;  %v956_v4 = vld [vmem:[#allocation2 + $0x30] sm:$0xff]  ;;  %vm477_vm0 = vcmask 130048   ;;  %vm664_vm1 = vcmask 80896  }
   0x7   :  { %v965_v1 = vld [vmem:[#allocation2 + $0x78] sm:$0xff]  ;;  %481 = vmatpush.bf16.msra.mxu0 %v957_v0  ;;  %v964_v5 = vld [vmem:[#allocation2 + $0x70] sm:$0xff]  ;;  %v955_v8 = vld [vmem:[#allocation2 + $0x28] sm:$0xff]  ;;  %s1070_s18 = smov [#allocation5]   ;;  %s673_s22 = sshll.u32 %s1186_s5, 4  ;;  %s674_s22 = int_to_ptr.hbm [resolvable:$true] %s673_s22 }
   0x8   :  { %v973_v2 = vld [vmem:[#allocation2 + $0xb8] sm:$0xff]  ;;  %495 = vmatpush.bf16.msra.mxu1 %v965_v1  ;;  %v972_v6 = vld [vmem:[#allocation2 + $0xb0] sm:$0xff]  ;;  %v963_v9 = vld [vmem:[#allocation2 + $0x68] sm:$0xff]  ;;  %s671_s19 = sshll.u32 %s1070_s18, 4  ;;  %s1071_s23 = smov 128   ;;  %s672_s19 = int_to_ptr.vmem [resolvable:$true] %s671_s19 }
   0x9   :  { %v981_v3 = vld [vmem:[#allocation2 + $0xf8] sm:$0xff]  ;;  %509 = vmatpush.bf16.msra.mxu2 %v973_v2  ;;  %v980_v7 = vld [vmem:[#allocation2 + $0xf0] sm:$0xff]  ;;  %v971_v10 = vld [vmem:[#allocation2 + $0xa8] sm:$0xff]  ;;  %s1072_s24 = smov 8  }
   0xa   :  { %523 = vmatpush.bf16.msra.mxu3 %v981_v3  ;;  %v979_v11 = vld [vmem:[#allocation2 + $0xe8] sm:$0xff]  ;;  %v954_v12 = vld [vmem:[#allocation2 + $0x20] sm:$0xff]  ;;  %v953_v16 = vld [vmem:[#allocation2 + $0x18] sm:$0xff] }
   0xb   :  { %482 = vmatpush.bf16.msra.mxu0 %v956_v4  ;;  %v962_v13 = vld [vmem:[#allocation2 + $0x60] sm:$0xff]  ;;  %v961_v17 = vld [vmem:[#allocation2 + $0x58] sm:$0xff]  ;;  %v952_v20 = vld [vmem:[#allocation2 + $0x10] sm:$0xff] }
   0xc   :  { %496 = vmatpush.bf16.msra.mxu1 %v964_v5  ;;  %v970_v14 = vld [vmem:[#allocation2 + $0xa0] sm:$0xff]  ;;  %v969_v18 = vld [vmem:[#allocation2 + $0x98] sm:$0xff]  ;;  %v960_v21 = vld [vmem:[#allocation2 + $0x50] sm:$0xff] }
   0xd   :  { %510 = vmatpush.bf16.msra.mxu2 %v972_v6  ;;  %v978_v15 = vld [vmem:[#allocation2 + $0xe0] sm:$0xff]  ;;  %v977_v19 = vld [vmem:[#allocation2 + $0xd8] sm:$0xff]  ;;  %v968_v22 = vld [vmem:[#allocation2 + $0x90] sm:$0xff] }
   0xe   :  { %524 = vmatpush.bf16.msra.mxu3 %v980_v7  ;;  %v976_v23 = vld [vmem:[#allocation2 + $0xd0] sm:$0xff]  ;;  %v951_v24 = vld [vmem:[#allocation2 + $0x8] sm:$0xff]  ;;  %v950_v28 = vld [vmem:[#allocation2] sm:$0xff] }
   0xf   :  { %483 = vmatpush.bf16.msra.mxu0 %v955_v8  ;;  %v959_v25 = vld [vmem:[#allocation2 + $0x48] sm:$0xff]  ;;  %v958_v29 = vld [vmem:[#allocation2 + $0x40] sm:$0xff]  ;;  %v946_v31 = vld [vmem:[%s1181_s0 + $0x18] sm:$0xf0] }
  0x10   :  { %497 = vmatpush.bf16.msra.mxu1 %v963_v9  ;;  %v967_v26 = vld [vmem:[#allocation2 + $0x88] sm:$0xff]  ;;  %v688_v30 = vld [vmem:[%s1181_s0] sm:$0xf]  ;;  %v943_v32 = vld [vmem:[%s1181_s0 + $0x4] sm:$0xf] }
  0x11   :  { %511 = vmatpush.bf16.msra.mxu2 %v971_v10  ;;  %v975_v27 = vld [vmem:[#allocation2 + $0xc8] sm:$0xff]  ;;  %v690_v33 = vld [vmem:[%s1181_s0 + $0x1c] sm:$0xf0]  ;;  %v989_v34 = vld [vmem:[#allocation2 + $0x138] sm:$0xff]  ;;  %v689_v40 = vor.u32 %v946_v31, %v688_v30 }
  0x12   :  { %525 = vmatpush.bf16.msra.mxu3 %v979_v11  ;;  %v997_v35 = vld [vmem:[#allocation2 + $0x178] sm:$0xff]  ;;  %v966_v36 = vld [vmem:[#allocation2 + $0x80] sm:$0xff]  ;;  %v696_v38 = vld [vmem:[%s1181_s0 + $0x8] sm:$0xf]  ;;  %v693_v43 = vor.u32 %v943_v32, %v690_v33 }
  0x13   :  { %484 = vmatpush.bf16.msra.mxu0 %v954_v12  ;;  %v974_v37 = vld [vmem:[#allocation2 + $0xc0] sm:$0xff]  ;;  %v944_v41 = vld [vmem:[%s1181_s0 + $0xc] sm:$0xf]  ;;  %v698_v42 = vld [vmem:[%s1181_s0 + $0x24] sm:$0xf0] }
  0x14   :  { %498 = vmatpush.bf16.msra.mxu1 %v962_v13  ;;  %v947_v39 = vld [vmem:[%s1181_s0 + $0x20] sm:$0xf0]  ;;  %v988_v45 = vld [vmem:[#allocation2 + $0x130] sm:$0xff]  ;;  %v701_v48 = vor.u32 %v944_v41, %v698_v42  ;;  %v987_v49 = vld [vmem:[#allocation2 + $0x128] sm:$0xff] }
  0x15   :  { %512 = vmatpush.bf16.msra.mxu2 %v970_v14  ;;  %v998_v44 = vld [vmem:[#allocation2 + $0x180] sm:$0xff]  ;;  %v996_v46 = vld [vmem:[#allocation2 + $0x170] sm:$0xff]  ;;  %v697_v47 = vor.u32 %v947_v39, %v696_v38  ;;  %v995_v50 = vld [vmem:[#allocation2 + $0x168] sm:$0xff] }
  0x16   :  { %526 = vmatpush.bf16.msra.mxu3 %v978_v15  ;;  %v986_v51 = vld [vmem:[#allocation2 + $0x120] sm:$0xff]  ;;  %v985_v53 = vld [vmem:[#allocation2 + $0x118] sm:$0xff]  ;;  %v949_v56 = vld [vmem:[%s1181_s0 + $0x30] sm:$0xf0] }
  0x17   :  { %485 = vmatpush.bf16.msra.mxu0 %v953_v16  ;;  %v994_v52 = vld [vmem:[#allocation2 + $0x160] sm:$0xff]  ;;  %v993_v54 = vld [vmem:[#allocation2 + $0x158] sm:$0xff]  ;;  %v984_v57 = vld [vmem:[#allocation2 + $0x110] sm:$0xff] }
  0x18   :  { %499 = vmatpush.bf16.msra.mxu1 %v961_v17  ;;  %v712_v55 = vld [vmem:[%s1181_s0 + $0x18] sm:$0xf]  ;;  %v992_v58 = vld [vmem:[#allocation2 + $0x150] sm:$0xff]  ;;  %v983_v60 = vld [vmem:[#allocation2 + $0x108] sm:$0xff] }
  0x19   :  { %513 = vmatpush.bf16.msra.mxu2 %v969_v18  ;;  %v713_v59 = vor.u32 %v949_v56, %v712_v55  ;;  %v991_v61 = vld [vmem:[#allocation2 + $0x148] sm:$0xff]  ;;  %v982_v62 = vld [vmem:[#allocation2 + $0x100] sm:$0xff]  ;;  %v704_v0 = vld [vmem:[%s1181_s0 + $0x10] sm:$0xf] }
  0x1a   :  { %527 = vmatpush.bf16.msra.mxu3 %v977_v19  ;;  %v990_v63 = vld [vmem:[#allocation2 + $0x140] sm:$0xff]  ;;  %v948_v1 = vld [vmem:[%s1181_s0 + $0x28] sm:$0xf0]  ;;  %v945_v2 = vld [vmem:[%s1181_s0 + $0x14] sm:$0xf] }
  0x1b   :  { %486 = vmatpush.bf16.msra.mxu0 %v952_v20  ;;  %v706_v3 = vld [vmem:[%s1181_s0 + $0x2c] sm:$0xf0]  ;;  %v705_v4 = vor.u32 %v948_v1, %v704_v0  ;;  %v1006_v6 = vld [vmem:[%s1184_s3 + $0x38] sm:$0xff]  ;;  %v1004_v8 = vld [vmem:[%s1184_s3 + $0x28] sm:$0xff] }
  0x1c   :  { %500 = vmatpush.bf16.msra.mxu1 %v960_v21  ;;  %v709_v5 = vor.u32 %v945_v2, %v706_v3  ;;  %v1005_v7 = vld [vmem:[%s1184_s3 + $0x30] sm:$0xff]  ;;  %v1003_v9 = vld [vmem:[%s1184_s3 + $0x20] sm:$0xff]  ;;  %v1002_v10 = vld [vmem:[%s1184_s3 + $0x18] sm:$0xff] }
  0x1d   :  { %514 = vmatpush.bf16.msra.mxu2 %v968_v22  ;;  %v1001_v11 = vld [vmem:[%s1184_s3 + $0x10] sm:$0xff]  ;;  %v1000_v12 = vld [vmem:[%s1184_s3 + $0x8] sm:$0xff]  ;;  %v999_v16 = vld [vmem:[%s1184_s3] sm:$0xff] }
  0x1e   :  { %528 = vmatpush.bf16.msra.mxu3 %v976_v23  ;;  %v1013_v17 = vld [vmem:[%s1183_s2] ss:$0 sm:$0xff] }
  0x1f   :  { %487 = vmatpush.bf16.msra.mxu0 %v951_v24 }
  0x20   :  { %501 = vmatpush.bf16.msra.mxu1 %v959_v25 }
  0x21   :  { %515 = vmatpush.bf16.msra.mxu2 %v967_v26 }
  0x22   :  { %529 = vmatpush.bf16.msra.mxu3 %v975_v27 }
  0x23   :  { %488 = vmatpush.bf16.msra.mxu0 %v950_v28 }
  0x24   :  { %502 = vmatpush.bf16.msra.mxu1 %v958_v29 }
  0x25   :  { %516 = vmatpush.bf16.msra.mxu2 %v966_v36 }
  0x26   :  { %530 = vmatpush.bf16.msra.mxu3 %v974_v37  ;;  %489 = vmatmul.bf16.vlgmr.msra.gmra.mxu0 %v689_v40 }
  0x27   :  { %537 = vmatpush.bf16.msrb.mxu0 %v989_v34  ;;  %503 = vmatmul.bf16.vlgmr.msra.gmra.mxu1 %v693_v43 }
  0x28   :  { %551 = vmatpush.bf16.msrb.mxu1 %v997_v35  ;;  %517 = vmatmul.bf16.vlgmr.msra.gmra.mxu2 %v697_v47 }
  0x29   :  { %572 = vmatpush.bf16.msrb.mxu2 %v998_v44  ;;  %531 = vmatmul.bf16.vlgmr.msra.gmra.mxu3 %v701_v48 }
  0x2a   :  { %650 = vmatpush.bf16.msrb.mxu3 %v1006_v6 }
  0x2b   :  { %538 = vmatpush.bf16.msrb.mxu0 %v988_v45 }
  0x2c   :  { %552 = vmatpush.bf16.msrb.mxu1 %v996_v46  ;;  %v1014_v46 = vld [vmem:[%s1185_s4] ss:$0 sm:$0xff] }
  0x2e   :  { %651 = vmatpush.bf16.msrb.mxu3 %v1005_v7 }
  0x2f   :  { %539 = vmatpush.bf16.msrb.mxu0 %v987_v49 }
  0x30   :  { %553 = vmatpush.bf16.msrb.mxu1 %v995_v50 }
  0x32   :  { %652 = vmatpush.bf16.msrb.mxu3 %v1004_v8 }
  0x33   :  { %540 = vmatpush.bf16.msrb.mxu0 %v986_v51 }
  0x34   :  { %554 = vmatpush.bf16.msrb.mxu1 %v994_v52 }
  0x36   :  { %653 = vmatpush.bf16.msrb.mxu3 %v1003_v9 }
  0x37   :  { %541 = vmatpush.bf16.msrb.mxu0 %v985_v53 }
  0x38   :  { %555 = vmatpush.bf16.msrb.mxu1 %v993_v54  ;;  %910 = vmatmul.msk.bf16.vlgmr.msrb.gmra.mxu2 %vm477_vm0, %v713_v59 }
  0x3a   :  { %654 = vmatpush.bf16.msrb.mxu3 %v1002_v10 }
  0x3b   :  { %542 = vmatpush.bf16.msrb.mxu0 %v984_v57 }
  0x3c   :  { %556 = vmatpush.bf16.msrb.mxu1 %v992_v58 }
  0x3e   :  { %655 = vmatpush.bf16.msrb.mxu3 %v1001_v11 }
  0x3f   :  { %543 = vmatpush.bf16.msrb.mxu0 %v983_v60 }
  0x40   :  { %557 = vmatpush.bf16.msrb.mxu1 %v991_v61 }
  0x42   :  { %656 = vmatpush.bf16.msrb.mxu3 %v1000_v12 }
  0x43   :  { %544 = vmatpush.bf16.msrb.mxu0 %v982_v62 }
  0x44   :  { %558 = vmatpush.bf16.msrb.mxu1 %v990_v63 }
  0x46   :  { %545 = vmatmul.bf16.vlgmr.msrb.gmra.mxu0 %v705_v4  ;;  %657 = vmatpush.bf16.msrb.mxu3 %v999_v16 }
  0x47   :  { %559 = vmatmul.bf16.vlgmr.msrb.gmra.mxu1 %v709_v5 }
  0xa3   :  { %v490_v13 = vpop.f32.mrf.mxu0 }
  0xa4   :  { %v504_v14 = vpop.f32.mrf.mxu1  ;;  %v491_v18 = vadd.f32 %v1013_v17, %v490_v13 }
  0xa6   :  { %v505_v22 = vadd.f32 %v504_v14, %v491_v18 }
  0xab   :  { %v518_v15 = vpop.f32.mrf.mxu2  ;;  %v492_v19 = vpop.f32.mrf.mxu0 }
  0xac   :  { %v506_v20 = vpop.f32.mrf.mxu1  ;;  %v532_v23 = vpop.f32.mrf.mxu3  ;;  %v493_v24 = vadd.f32 %v1013_v17, %v492_v19  ;;  %v519_v25 = vadd.f32 %v518_v15, %v505_v22 }
  0xae   :  { %v507_v26 = vadd.f32 %v506_v20, %v493_v24  ;;  %v533_v29 = vadd.f32 %v532_v23, %v519_v25 }
  0xb3   :  { %v520_v21 = vpop.f32.mrf.mxu2 }
  0xb4   :  { %v521_v31 = vadd.f32 %v520_v21, %v507_v26  ;;  %v534_v33 = vpop.f32.mrf.mxu3 }
  0xb6   :  { %v535_v34 = vadd.f32 %v534_v33, %v521_v31 }
  0xbb   :  { %v574_v30 = vpop.f32.mrf.mxu2 }
  0xc3   :  { %v546_v27 = vpop.f32.mrf.mxu0  ;;  %v576_v41 = vpop.f32.mrf.mxu2 }
  0xc4   :  { %v560_v28 = vpop.f32.mrf.mxu1  ;;  %v547_v32 = vadd.f32 %v546_v27, %v533_v29 }
  0xc6   :  { %v561_v35 = vadd.f32 %v560_v28, %v547_v32 }
  0xc8   :  { %v575_v39 = vadd.f32 %v574_v30, %v561_v35 }
  0xca   :  { %v579_v43 = vmax.f32 %v575_v39, 0.0 }
  0xcb   :  { %v548_v36 = vpop.f32.mrf.mxu0 }
  0xcc   :  { %v549_v37 = vadd.f32 %v548_v36, %v535_v34  ;;  %v562_v38 = vpop.f32.mrf.mxu1 }
  0xce   :  { %v563_v40 = vadd.f32 %v562_v38, %v549_v37 }
  0xd0   :  { %v577_v42 = vadd.f32 %v576_v41, %v563_v40 }
  0xd2   :  { %v580_v44 = vmax.f32 %v577_v42, 0.0 }
  0xd4   :  { %v581_v45 = vpack.c.bf16 %v580_v44, %v579_v43 }
  0xd6   :  { %658 = vmatmul.bf16.vlgmr.msrb.gmra.mxu3 %v581_v45 }
 0x159   :  { %v659_v47 = vpop.f32.mrf.mxu3 }
 0x15a   :  { %v660_v48 = vadd.f32 %v1014_v46, %v659_v47 }
 0x15c   :  { %665 = vst.msk [vmem:[#allocation5] sm:$0xff] %vm664_vm1, %v660_v48 }
 0x161   :  { %v661_v49 = vpop.f32.mrf.mxu3 }
 0x162   :  { %v662_v50 = vadd.f32 %v1014_v46, %v661_v49 }
 0x164   :  { %666 = vst.msk [vmem:[#allocation5 + $0x8] sm:$0xff] %vm664_vm1, %v662_v50 }
 0x165   :  { %679 = dma.vmem_to_hbm [thread:$0]  %s672_s19, 256, %s674_s22, [#allocation4], %s1071_s23, %s1071_s23, %s1072_s24  }
 0x166   :  { %1065 = dma.done.wait [#allocation4], 256  }
 0x167   :  { %1066 = vsyncadd [#allocation4], 4294967040 }
 0x168   :  { %684 = vsyncpa [#allocation3], 1 }
 0x169   :  { %685 = vsyncpa [#allocation4], 1 }

</bundles_post_ra>
